<compile_context>
chip_gen: v5e
topology: v5e:2x2
jax: 0.10.0
libtpu: 0.0.40
codegen_flags: <defaults>
</compile_context>

<pallas_src>
import functools

import jax
import jax.numpy as jnp
from jax import lax
from jax.experimental import pallas as pl
from jax.experimental.pallas import tpu as pltpu

MARGIN = 0.0            # ContrastiveLoss(margin=0, measure=False, max_violation=True)
# TODO(synk): measure='order' (order_sim) and max_violation=False (sum instead
# of max) are not exercised by this config and are not implemented here.


def _contrastive_kernel(dcol_ref, drow_ref, e1_ref, e2_ref,
                        orow_ref, ocol_ref, *, tm, tn, n_valid, n_pad):
    i = pl.program_id(0)          # emb1 (row) block    -- outer, "parallel"
    j = pl.program_id(1)          # emb2 (column) block -- inner, "arbitrary"

    # scores tile (tm, tn): bf16 x bf16 -> f32 accumulate on the MXU, feature
    # axes contracted directly (no explicit transpose of the emb2 tile).
    # TODO(synk): confirm in the bundle dump that no per-step vxpose of the
    # (tn, d) RHS tile is emitted; if it is, pre-transpose emb2 to (D, N).
    scores = lax.dot_general(
        e1_ref[...], e2_ref[...],
        dimension_numbers=(((1,), (1,)), ((), ())),
        preferred_element_type=jnp.float32)

    base_s = scores - dcol_ref[...]       # row-anchored (query diagonal)
    base_im = scores - drow_ref[...]      # column-anchored
    if MARGIN != 0.0:
        base_s = base_s + MARGIN
        base_im = base_im + MARGIN
    cost_s = jnp.maximum(base_s, 0.0)
    cost_im = jnp.maximum(base_im, 0.0)

    # Diagonal masking is a numerical no-op when MARGIN == 0 (diag cost clamps
    # to exactly 0), so only emit the iota/compare/select work when needed.
    if MARGIN != 0.0:
        row_g = i * tm + lax.broadcasted_iota(jnp.int32, (tm, tn), 0)
        col_g = j * tn + lax.broadcasted_iota(jnp.int32, (tm, tn), 1)
        eye = row_g == col_g
        cost_s = jnp.where(eye, 0.0, cost_s)
        cost_im = jnp.where(eye, 0.0, cost_im)

    # Padding correctness: padded scores are 0 but real diag values can be
    # negative, so max(0 - diag, 0) would leak spurious positive cost.  Only
    # emitted when padding exists (trace-time constant).
    if n_pad != n_valid:
        col_valid = (j * tn + lax.broadcasted_iota(jnp.int32, (1, tn), 1)) < n_valid
        row_valid = (i * tm + lax.broadcasted_iota(jnp.int32, (tm, 1), 0)) < n_valid
        cost_s = jnp.where(col_valid, cost_s, 0.0)     # real row vs padded col
        cost_im = jnp.where(row_valid, cost_im, 0.0)   # padded row vs real col
        if MARGIN != 0.0:                              # margin would leak too
            cost_s = jnp.where(row_valid, cost_s, 0.0)
            cost_im = jnp.where(col_valid, cost_im, 0.0)

    # Per-tile partial reductions.
    row_max_tile = jnp.max(cost_s, axis=1, keepdims=True)    # (tm, 1)
    col_max_tile = jnp.max(cost_im, axis=0, keepdims=True)   # (1, tn)

    # Column-max partials: one independent lane-dense output block per (i, j).
    ocol_ref[0] = col_max_tile

    # Row maxes accumulate across the inner j axis directly in the resident
    # output block (costs are >= 0, so 0 is a valid identity).
    @pl.when(j == 0)
    def _():
        orow_ref[...] = jnp.zeros_like(orow_ref)
    orow_ref[...] = jnp.maximum(orow_ref[...], row_max_tile)


def _round_up(x, m):
    return (x + m - 1) // m * m


def _choose_tiles(n):
    """Returns (n_pad, tm, tn).

    tm = stationary emb1 (row) block (grow it to cut emb2 HBM refetch),
    tn = streaming emb2 (column) block (must be a multiple of 128 or the
    full padded extent because it is a lane dimension of the diag row).
    """
    if n <= 512:
        n_pad = _round_up(n, 8)
        return n_pad, n_pad, n_pad            # single tile each way, no refetch
    n_pad = _round_up(n, 256)
    tm = 512 if n_pad % 512 == 0 else 256     # bigger stationary block if it divides
    tn = 256
    # TODO(synk): add a k (feature) grid axis for very large D (>~4K) and
    # sweep tm/tn + vmem_limit_bytes per generation (raise on v5e, cap on v7x).
    return n_pad, tm, tn


def contrastive_loss(emb1, emb2, *, tile_override=None):
    """Pallas TPU ContrastiveLoss.forward (cosine sim, margin=0, max_violation)."""
    n, d = emb1.shape
    assert emb2.shape == (n, d)

    # bf16 feeds the MXU natively on v5e/v6e/v7x; f32 accumulation happens in
    # the kernel via preferred_element_type.
    e1 = emb1.astype(jnp.bfloat16)
    e2 = emb2.astype(jnp.bfloat16)

    # diag(emb1 @ emb2.T) == rowsum(emb1 * emb2): O(N*D), computed once from
    # the same bf16 values the MXU sees.
    diag = jnp.sum(e1.astype(jnp.float32) * e2.astype(jnp.float32), axis=1)

    n_pad, tm, tn = tile_override if tile_override is not None else _choose_tiles(n)
    assert n_pad >= n and n_pad % tm == 0 and n_pad % tn == 0
    if n_pad != n:
        pad = n_pad - n
        e1 = jnp.pad(e1, ((0, pad), (0, 0)))
        e2 = jnp.pad(e2, ((0, pad), (0, 0)))
        diag = jnp.pad(diag, (0, pad))

    num_i = n_pad // tm          # emb1 row blocks (outer, parallel)
    num_j = n_pad // tn          # emb2 column blocks (inner, arbitrary)

    diag_col = diag.reshape(n_pad, 1)
    diag_row = diag.reshape(1, n_pad)

    kernel = functools.partial(_contrastive_kernel, tm=tm, tn=tn,
                               n_valid=n, n_pad=n_pad)

    grid_spec = pltpu.PrefetchScalarGridSpec(
        num_scalar_prefetch=0,
        grid=(num_i, num_j),
        in_specs=[
            pl.BlockSpec((tm, 1), lambda i, j: (i, 0)),       # diag, column form
            pl.BlockSpec((1, tn), lambda i, j: (0, j)),       # diag, row form
            pl.BlockSpec((tm, d), lambda i, j: (i, 0)),       # emb1 row block (stationary)
            pl.BlockSpec((tn, d), lambda i, j: (j, 0)),       # emb2 col block (streams)
        ],
        out_specs=[
            pl.BlockSpec((tm, 1), lambda i, j: (i, 0)),       # per-row max (acc over j)
            pl.BlockSpec((1, 1, tn), lambda i, j: (i, 0, j)), # per-(i,j) col-max partials
        ],
    )

    emb_bytes = 2  # bf16
    cost = pl.CostEstimate(
        flops=2 * n_pad * n_pad * d,
        transcendentals=0,
        bytes_accessed=((num_i + 1) * n_pad * d * emb_bytes   # emb2 refetch + emb1 once
                        + (num_i + 1) * n_pad * 4             # diag traffic
                        + (num_i + 1) * n_pad * 4),            # outputs
    )

    row_max, col_part = pl.pallas_call(
        kernel,
        grid_spec=grid_spec,
        out_shape=(
            jax.ShapeDtypeStruct((n_pad, 1), jnp.float32),
            jax.ShapeDtypeStruct((num_i, 1, n_pad), jnp.float32),
        ),
        compiler_params=pltpu.CompilerParams(
            # Outer row-block axis carries no cross-block state -> splittable
            # across the two v7x TensorCores; inner axis holds the running
            # per-row max in the resident output block -> arbitrary.
            dimension_semantics=("parallel", "arbitrary"),
        ),
        cost_estimate=cost,
    )(diag_col, diag_row, e1, e2)

    # Tiny O(num_i * N) epilogue in XLA: finish the column max over row blocks
    # and the two sums.  Padded rows/columns contribute exactly 0.
    col_max = jnp.max(col_part[:, 0, :], axis=0)
    return jnp.sum(row_max) + jnp.sum(col_max)


def _reference(emb1, emb2, margin=MARGIN, bf16_scores=True):
    # Pure-JAX reference mirroring the PyTorch forward.  bf16_scores=True
    # mirrors the kernel's MXU precision (bf16 inputs, f32 accumulation).
    if bf16_scores:
        scores = lax.dot_general(
            emb1.astype(jnp.bfloat16), emb2.astype(jnp.bfloat16),
            dimension_numbers=(((1,), (1,)), ((), ())),
            preferred_element_type=jnp.float32)
    else:
        scores = emb1 @ emb2.T
    diag = jnp.diag(scores).reshape(-1, 1)
    cost_s = jnp.maximum(margin + scores - diag, 0.0)
    cost_im = jnp.maximum(margin + scores - diag.T, 0.0)
    eye = jnp.eye(scores.shape[0], dtype=bool)
    cost_s = jnp.where(eye, 0.0, cost_s)
    cost_im = jnp.where(eye, 0.0, cost_im)
    return jnp.max(cost_s, axis=1).sum() + jnp.max(cost_im, axis=0).sum()


if __name__ == "__main__":
    key = jax.random.PRNGKey(0)

    def _check(n, d, tile_override=None, label=""):
        k1, k2 = jax.random.split(jax.random.fold_in(key, n * 1000 + d))
        emb1 = jax.random.normal(k1, (n, d), dtype=jnp.float32)
        emb2 = jax.random.normal(k2, (n, d), dtype=jnp.float32)
        loss = jax.block_until_ready(
            contrastive_loss(emb1, emb2, tile_override=tile_override))
        ref_b = jax.block_until_ready(_reference(emb1, emb2, bf16_scores=True))
        ref_f = jax.block_until_ready(_reference(emb1, emb2, bf16_scores=False))
        assert jnp.allclose(loss, ref_b, rtol=1e-3, atol=1e-2), (label, loss, ref_b)
        # loose check vs the full-f32 module semantics (bf16 MXU tolerance)
        assert jnp.allclose(loss, ref_f, rtol=3e-2, atol=0.5), (label, loss, ref_f)

    _check(8, 32, label="single-tile")                             # batch=8, hidden=32
    _check(12, 32, label="padded-single-tile")                     # padding masks
    _check(200, 32, tile_override=(256, 128, 128), label="tiled")  # 2x2 grid + padding
    print("KERNEL_OK")
</pallas_src>

<mosaic_0001>
module attributes {stable_mosaic.version = 11 : i64} {
  func.func @_contrastive_kernel(%arg0: i32, %arg1: i32, %arg2: memref<8x1xf32, #tpu.memory_space<vmem>>, %arg3: memref<1x8xf32, #tpu.memory_space<vmem>>, %arg4: memref<8x32xbf16, #tpu.memory_space<vmem>>, %arg5: memref<8x32xbf16, #tpu.memory_space<vmem>>, %arg6: memref<8x1xf32, #tpu.memory_space<vmem>>, %arg7: memref<1x1x8xf32, #tpu.memory_space<vmem>>) attributes {dimension_semantics = [#tpu.dimension_semantics<parallel>, #tpu.dimension_semantics<arbitrary>], iteration_bounds = array<i64: 1, 1>, scalar_prefetch = 0 : i64, scratch_operands = 0 : i64, tpu.core_type = #tpu.core_type<tc>, window_params = [{transform_indices = @transform_0, window_bounds = array<i64: 8, 1>}, {transform_indices = @transform_1, window_bounds = array<i64: 1, 8>}, {transform_indices = @transform_2, window_bounds = array<i64: 8, 32>}, {transform_indices = @transform_3, window_bounds = array<i64: 8, 32>}, {transform_indices = @transform_4, window_bounds = array<i64: 8, 1>}, {transform_indices = @transform_5, window_bounds = array<i64: 1, 1, 8>}]} {
    %c0 = arith.constant 0 : index
    %c0_0 = arith.constant 0 : index
    %0 = vector.load %arg4[%c0, %c0_0] : memref<8x32xbf16, #tpu.memory_space<vmem>>, vector<8x32xbf16>
    %c0_1 = arith.constant 0 : index
    %c0_2 = arith.constant 0 : index
    %1 = vector.load %arg5[%c0_1, %c0_2] : memref<8x32xbf16, #tpu.memory_space<vmem>>, vector<8x32xbf16>
    %cst = arith.constant dense<0.000000e+00> : vector<8x8xf32>
    %2 = tpu.matmul %0, %1, %cst {dimension_numbers = #tpu.dot_dimension_numbers<[1], [1], [0], [0], [0, 0, 1, 0], [], []>} : vector<8x32xbf16>, vector<8x32xbf16>, vector<8x8xf32> -> vector<8x8xf32>
    %c0_3 = arith.constant 0 : index
    %c0_4 = arith.constant 0 : index
    %3 = vector.load %arg2[%c0_3, %c0_4] : memref<8x1xf32, #tpu.memory_space<vmem>>, vector<8x1xf32>
    %4 = vector.broadcast %3 : vector<8x1xf32> to vector<8x8xf32>
    %5 = arith.subf %2, %4 : vector<8x8xf32>
    %c0_5 = arith.constant 0 : index
    %c0_6 = arith.constant 0 : index
    %6 = vector.load %arg3[%c0_5, %c0_6] : memref<1x8xf32, #tpu.memory_space<vmem>>, vector<1x8xf32>
    %7 = vector.broadcast %6 : vector<1x8xf32> to vector<8x8xf32>
    %8 = arith.subf %2, %7 : vector<8x8xf32>
    %cst_7 = arith.constant 0.000000e+00 : f32
    %9 = vector.broadcast %cst_7 : f32 to vector<8x8xf32>
    %10 = arith.maximumf %5, %9 : vector<8x8xf32>
    %cst_8 = arith.constant 0.000000e+00 : f32
    %11 = vector.broadcast %cst_8 : f32 to vector<8x8xf32>
    %12 = arith.maximumf %8, %11 : vector<8x8xf32>
    %cst_9 = arith.constant dense<0xFF800000> : vector<8xf32>
    %13 = vector.multi_reduction <maximumf>, %10, %cst_9 [1] : vector<8x8xf32> to vector<8xf32>
    %14 = vector.shape_cast %13 : vector<8xf32> to vector<8x1xf32>
    %cst_10 = arith.constant dense<0xFF800000> : vector<8xf32>
    %15 = vector.multi_reduction <maximumf>, %12, %cst_10 [0] : vector<8x8xf32> to vector<8xf32>
    %16 = vector.shape_cast %15 : vector<8xf32> to vector<1x8xf32>
    %c0_11 = arith.constant 0 : index
    %c0_12 = arith.constant 0 : index
    %c0_13 = arith.constant 0 : index
    %17 = vector.load %arg7[%c0_11, %c0_12, %c0_13] : memref<1x1x8xf32, #tpu.memory_space<vmem>>, vector<1x1x8xf32>
    %18 = vector.shape_cast %17 : vector<1x1x8xf32> to vector<1x8xf32>
    %19 = vector.shape_cast %16 : vector<1x8xf32> to vector<1x1x8xf32>
    tpu.vector_store %arg7[%c0_11, %c0_12, %c0_13], %19 {strides = array<i32>} : memref<1x1x8xf32, #tpu.memory_space<vmem>>, vector<1x1x8xf32>,
    %c0_i32 = arith.constant 0 : i32
    %20 = arith.cmpi eq, %arg1, %c0_i32 : i32
    %21 = arith.extui %20 : i1 to i32
    %c0_i32_14 = arith.constant 0 : i32
    %22 = arith.cmpi ne, %21, %c0_i32_14 : i32
    scf.if %22 {
      %cst_19 = arith.constant 0.000000e+00 : f32
      %26 = vector.broadcast %cst_19 : f32 to vector<8x1xf32>
      %c0_20 = arith.constant 0 : index
      %c0_21 = arith.constant 0 : index
      %27 = vector.load %arg6[%c0_20, %c0_21] : memref<8x1xf32, #tpu.memory_space<vmem>>, vector<8x1xf32>
      tpu.vector_store %arg6[%c0_20, %c0_21], %26 {strides = array<i32>} : memref<8x1xf32, #tpu.memory_space<vmem>>, vector<8x1xf32>,
    } else {
    }
    %c0_15 = arith.constant 0 : index
    %c0_16 = arith.constant 0 : index
    %23 = vector.load %arg6[%c0_15, %c0_16] : memref<8x1xf32, #tpu.memory_space<vmem>>, vector<8x1xf32>
    %24 = arith.maximumf %23, %14 : vector<8x1xf32>
    %c0_17 = arith.constant 0 : index
    %c0_18 = arith.constant 0 : index
    %25 = vector.load %arg6[%c0_17, %c0_18] : memref<8x1xf32, #tpu.memory_space<vmem>>, vector<8x1xf32>
    tpu.vector_store %arg6[%c0_17, %c0_18], %24 {strides = array<i32>} : memref<8x1xf32, #tpu.memory_space<vmem>>, vector<8x1xf32>,
    return
  }
  func.func @transform_0(%arg0: i32, %arg1: i32) -> (i32, i32) {
    %c0_i32 = arith.constant 0 : i32
    %c0_i32_0 = arith.constant 0 : i32
    return %arg0, %c0_i32 : i32, i32
  }
  func.func @transform_1(%arg0: i32, %arg1: i32) -> (i32, i32) {
    %c0_i32 = arith.constant 0 : i32
    %c0_i32_0 = arith.constant 0 : i32
    return %c0_i32, %arg1 : i32, i32
  }
  func.func @transform_2(%arg0: i32, %arg1: i32) -> (i32, i32) {
    %c0_i32 = arith.constant 0 : i32
    %c0_i32_0 = arith.constant 0 : i32
    return %arg0, %c0_i32 : i32, i32
  }
  func.func @transform_3(%arg0: i32, %arg1: i32) -> (i32, i32) {
    %c0_i32 = arith.constant 0 : i32
    %c0_i32_0 = arith.constant 0 : i32
    return %arg1, %c0_i32 : i32, i32
  }
  func.func @transform_4(%arg0: i32, %arg1: i32) -> (i32, i32) {
    %c0_i32 = arith.constant 0 : i32
    %c0_i32_0 = arith.constant 0 : i32
    return %arg0, %c0_i32 : i32, i32
  }
  func.func @transform_5(%arg0: i32, %arg1: i32) -> (i32, i32, i32) {
    %c0_i32 = arith.constant 0 : i32
    %c0_i32_0 = arith.constant 0 : i32
    return %arg0, %c0_i32, %arg1 : i32, i32, i32
  }
}

</mosaic_0001>

<bundles_post_ra>
// kernel: tpu_custom_call.1
= control target key start
LH: loop header
LB: loop body
LE: loop exit
PB: predicated region body
PF: predicated region fallthrough
CT: control target
= control target key end

     0   :  { %vm23_vm0 = vcmask 261120   ;;  %v132_v2 = vmov 0   ;;  %s191_s0 = inlined_call_operand.vmem [shape: f32[8,1], index: 0, kind: input, shape index: {}]   ;;  %s192_s1 = inlined_call_operand.vmem [shape: f32[1,8], index: 1, kind: input, shape index: {}]   ;;  %s193_s2 = inlined_call_operand.vmem [shape: bf16[8,32], index: 2, kind: input, shape index: {}]   ;;  %s194_s3 = inlined_call_operand.vmem [shape: bf16[8,32], index: 3, kind: input, shape index: {}]   ;;  %s195_s4 = inlined_call_operand.vmem [shape: f32[8,1], index: 4, kind: output, shape index: {0}]   ;;  %s196_s5 = inlined_call_operand.hbm [shape: f32[1,1,8], index: 5, kind: output, shape index: {1}]  }
   0x1   :  { %v22_v0 = vld [vmem:[%s194_s3] sm:$0xf]  ;;  %104 = vset.pattern.permute.xlu0 %v132_v2 }
   0x2   :  { %v28_v1 = vsel %vm23_vm0, %v22_v0, 0  ;;  %v43_v3 = vld [vmem:[%s191_s0] sm:$0xff] }
   0x3   :  { %11 = vsyncpa [#allocation3], 0  ;;  %37 = vmatpush.bf16.xpose.msra.mxu0 %v28_v1  ;;  %46 = vperm.xlu0 %104, %v43_v3   ;;  %v21_v4 = vld [vmem:[%s193_s2] sm:$0xf]  ;;  %vm74_vm1 = vcmask 7168   ;;  %v133_v5 = vmov 0.0  }
   0x4   :  { %75 = vst.msk [vmem:[%s195_s4] sm:$0xff] %vm74_vm1, %v133_v5  ;;  %v105_v6 = vld [vmem:[%s192_s1] ss:$0 sm:$0xff]  ;;  %vm57_vm2 = vcmask 64512   ;;  %s134_s0 = smov [#allocation2]   ;;  %s89_s1 = sshll.u32 %s196_s5, 4  ;;  %s90_s1 = int_to_ptr.hbm [resolvable:$true] %s89_s1 }
   0x5   :  { %s87_s2 = sshll.u32 %s134_s0, 4  ;;  %vm68_vm3 = vcmask 57344   ;;  %s88_s2 = int_to_ptr.vmem [resolvable:$true] %s87_s2 }
   0xa   :  { %100 = vmatmul.msk.bf16.vlgmr.msra.gmra.mxu0 %vm23_vm0, %v21_v4 }
   0xb   :  { %v76_v22 = vld [vmem:[%s195_s4] sm:$0xff] }
  0x75   :  { %v47_v7 = vpop.permute.xlu0 %46 }
  0x87   :  { %v39_v8 = vpop.f32.mrf.mxu0 }
  0x88   :  { %v49_v9 = vsub.f32 %v39_v8, %v47_v7  ;;  %v54_v10 = vsub.f32 %v39_v8, %v105_v6 }
  0x8a   :  { %v55_v11 = vmax.f32 %v49_v9, 0.0  ;;  %v56_v12 = vmax.f32 %v54_v10, 0.0 }
  0x8c   :  { %v58_v13 = vsel %vm57_vm2, %v55_v11, -inf  ;;  %v61_v14 = vsel %vm57_vm2, %v56_v12, -inf }
  0x8d   :  { %v62_v15 = vrot.slane %v61_v14, 4  ;;  %59 = vmax.xlane.f32.xlu0 %v58_v13 }
  0x8f   :  { %v63_v16 = vmax.f32 %v61_v14, %v62_v15  ;;  %v41_v17 = vpop.f32.mrf.mxu0 }
  0x91   :  { %v64_v18 = vrot.slane %v63_v16, 2 }
  0x93   :  { %v65_v19 = vmax.f32 %v63_v16, %v64_v18 }
  0x95   :  { %v66_v20 = vrot.slane %v65_v19, 1 }
  0x97   :  { %v67_v21 = vmax.f32 %v65_v19, %v66_v20 }
  0x99   :  { %69 = vst.msk [vmem:[#allocation2] sm:$0x1] %vm68_vm3, %v67_v21 }
  0x9a   :  { %92 = dma.vmem_to_hbm [thread:$0]  %s88_s2, 16, %s90_s1, [#allocation3]  }
 0x100   :  { %v60_v23 = vpop.xlane.xlu0 %59 }
 0x101   :  { %v77_v24 = vmax.f32 %v76_v22, %v60_v23 }
 0x103   :  { %79 = vst.msk [vmem:[%s195_s4] sm:$0xff] %vm74_vm1, %v77_v24 }
 0x104   :  { %130 = dma.done.wait [#allocation3], 16  }
 0x105   :  { %131 = vsyncadd [#allocation3], 4294967280 }
 0x106   :  { %99 = vsyncpa [#allocation3], 1 }

</bundles_post_ra>
